<compile_context>
chip_gen: v7x
topology: tpu7x:2x2x1
jax: 0.10.0
libtpu: 0.0.40
codegen_flags: <defaults>
</compile_context>

<pallas_src>
import math

import jax
import jax.numpy as jnp
import numpy as np
from jax import lax
from jax.experimental import pallas as pl
from jax.experimental.pallas import tpu as pltpu


def _round_up(x, m):
    return ((x + m - 1) // m) * m


def _round_down(x, m):
    return (x // m) * m


def _cdiv(a, b):
    return (a + b - 1) // b


def _choose_tiles(R, L, itemsize, target_bytes=4 * 1024 * 1024):
    """Pick (TR, TL) budgeting PHYSICAL VMEM bytes (lane/sublane padding).

    Block-shape rule: each of the last two block dims must be a multiple of
    (sublane, 128) or equal the full array dim; both branches guarantee that.
    """
    sub = max(8, 32 // itemsize)           # packed sublane multiple per dtype
    lane_L = _round_up(L, 128)             # physical lanes when TL == L
    rows_full = target_bytes // max(lane_L * itemsize, 1)

    if rows_full >= sub or R <= rows_full:
        # Whole rows fit: no reduction tiling (Variant A).
        tl = L
        if R < sub:
            tr = R                          # full dim is always legal
        else:
            tr = _round_down(min(rows_full, R), sub)
            tr = max(tr, sub)
            tr = min(tr, 1024)              # huge TR buys nothing per-row
            if R >= 2 * sub:
                # keep >= 2 row tiles so the "parallel" axis can shard
                # across v7x's two TensorCores.
                tr = min(tr, _round_up(_cdiv(R, 2), sub))
    else:
        # Long rows: tile the reduction (lane) axis (Variant B).
        tr = sub if R >= sub else R
        phys_rows = _round_up(tr, sub)
        tl = _round_down(target_bytes // max(phys_rows * itemsize, 1), 128)
        tl = max(tl, 128)
        if L >= 128:
            tl = min(tl, _round_down(L, 128))
        else:
            tl = L
        # Prefer a TL that divides L so no tail mask is ever needed.
        if tl >= 256 and L % tl != 0:
            lo = max(tl // 2, 128)
            for cand in range(tl, lo - 1, -128):
                if L % cand == 0:
                    tl = cand
                    break
    return max(tr, 1), max(tl, 1)


def _vmem_footprint_bytes(TR, TL, itemsize, streaming):
    sub = max(8, 32 // itemsize)
    blk = _round_up(TR, sub) * _round_up(TL, 128) * itemsize
    out = _round_up(TR, 8) * 128 * 4
    total = 2 * 2 * blk + 2 * out                  # 2 inputs x 2 bufs + out
    if streaming:
        total += 2 * _round_up(TR, 8) * 128 * 4    # two (TR,128) f32 accs
    return total


def _make_single_pass_kernel(eps):
    eps = float(eps)  # plain python float -> folded literal, not a captured array

    def _snr_kernel(s_ref, sn_ref, y_ref):
        s = s_ref[...].astype(jnp.float32)
        sn = sn_ref[...].astype(jnp.float32)
        n = sn - s
        s2 = jnp.sum(s * s, axis=-1, keepdims=True)
        n2 = jnp.sum(n * n, axis=-1, keepdims=True)
        # eps added once after the full sum (matches the reference);
        # log10(a/b) == log10(a) - log10(b): both land on the EUP.
        y_ref[...] = jnp.log10(s2 + eps) - jnp.log10(n2 + eps)

    return _snr_kernel


def _make_streaming_kernel(eps, L, TL, num_k, need_mask):
    eps = float(eps)
    n_chunks = TL // 128
    last = num_k - 1

    def _snr_kernel(s_ref, sn_ref, y_ref, s2_acc, n2_acc):
        k = pl.program_id(1)

        @pl.when(k == 0)
        def _():
            s2_acc[...] = jnp.zeros_like(s2_acc)
            n2_acc[...] = jnp.zeros_like(n2_acc)

        def accumulate(masked):
            # Lane-dense partial sums: plain full-width VPU adds per 128-lane
            # chunk; no cross-lane reduce on the per-step path.
            base = last * TL
            for c in range(n_chunks):
                start = base + c * 128
                if masked and start >= L:
                    break  # chunk fully past the tail: contributes nothing
                s = s_ref[:, c * 128:(c + 1) * 128].astype(jnp.float32)
                sn = sn_ref[:, c * 128:(c + 1) * 128].astype(jnp.float32)
                if masked and start + 128 > L:
                    lane = lax.broadcasted_iota(jnp.int32, s.shape, 1)
                    valid = (start + lane) < L
                    s = jnp.where(valid, s, 0.0)
                    sn = jnp.where(valid, sn, 0.0)
                n = sn - s
                s2_acc[...] += s * s
                n2_acc[...] += n * n

        if need_mask:
            # Mask only ever executes on the final reduction tile.
            @pl.when(k < last)
            def _():
                accumulate(False)

            @pl.when(k == last)
            def _():
                accumulate(True)
        else:
            accumulate(False)

        @pl.when(k == last)
        def _():
            s2 = jnp.sum(s2_acc[...], axis=-1, keepdims=True)
            n2 = jnp.sum(n2_acc[...], axis=-1, keepdims=True)
            y_ref[...] = jnp.log10(s2 + eps) - jnp.log10(n2 + eps)

    return _snr_kernel


def signal_to_noise_ratio(s, sn, *, frame_length=None, full=False,
                          reduction="mean", eps=1e-8):
    """JAX/Pallas port of diffsptk SignalToNoiseRatio.forward."""
    assert reduction in ("none", "mean", "sum")
    assert eps >= 0
    orig_dtype = s.dtype

    if frame_length is not None:
        assert frame_length >= 1
        Lf = int(frame_length)
        T = s.shape[-1]
        n_frames = T // Lf  # torch.unfold(-1, L, L) drops the remainder
        s = s[..., : n_frames * Lf].reshape(s.shape[:-1] + (n_frames, Lf))
        sn = sn[..., : n_frames * Lf].reshape(sn.shape[:-1] + (n_frames, Lf))

    lead_shape = s.shape[:-1]
    L = int(s.shape[-1])
    R = int(math.prod(lead_shape)) if lead_shape else 1

    # Native dtype straight into the kernel (kernel casts to f32 per block).
    s2d = s.reshape(R, L)
    sn2d = sn.reshape(R, L)

    itemsize = jnp.dtype(s2d.dtype).itemsize
    TR, TL = _choose_tiles(R, L, itemsize)
    num_r = _cdiv(R, TR)
    num_k = _cdiv(L, TL)
    need_mask = (L % TL) != 0
    streaming = num_k > 1

    # Explicit scoped-VMEM limit: 4 MiB blocks x 2 inputs x 2 buffers exceeds
    # v5e's 16 MiB default; 48 MiB still leaves headroom on v7x (64 MiB phys).
    footprint = _vmem_footprint_bytes(TR, TL, itemsize, streaming)
    vmem_limit = min(max(footprint + (8 << 20), 32 << 20), 48 << 20)

    if streaming:
        kernel = _make_streaming_kernel(float(eps), L, TL, num_k, need_mask)
        grid_spec = pltpu.PrefetchScalarGridSpec(
            num_scalar_prefetch=0,
            grid=(num_r, num_k),
            in_specs=[
                pl.BlockSpec((TR, TL), lambda i, k: (i, k)),
                pl.BlockSpec((TR, TL), lambda i, k: (i, k)),
            ],
            out_specs=pl.BlockSpec((TR, 1), lambda i, k: (i, 0)),
            scratch_shapes=[
                pltpu.VMEM((TR, 128), jnp.float32),
                pltpu.VMEM((TR, 128), jnp.float32),
            ],
        )
        dim_sem = ("parallel", "arbitrary")
    else:
        kernel = _make_single_pass_kernel(float(eps))
        grid_spec = pltpu.PrefetchScalarGridSpec(
            num_scalar_prefetch=0,
            grid=(num_r,),
            in_specs=[
                pl.BlockSpec((TR, TL), lambda i: (i, 0)),
                pl.BlockSpec((TR, TL), lambda i: (i, 0)),
            ],
            out_specs=pl.BlockSpec((TR, 1), lambda i: (i, 0)),
        )
        dim_sem = ("parallel",)

    y2d = pl.pallas_call(
        kernel,
        out_shape=jax.ShapeDtypeStruct((R, 1), jnp.float32),
        grid_spec=grid_spec,
        compiler_params=pltpu.CompilerParams(
            dimension_semantics=dim_sem,
            vmem_limit_bytes=int(vmem_limit)),
    )(s2d, sn2d)

    y = y2d.reshape(lead_shape) if lead_shape else y2d.reshape(())

    if frame_length is not None and y.ndim > 0 and y.shape[-1] == 1:
        # torch's y.squeeze(-1): only drops the dim when it is size 1.
        y = jnp.squeeze(y, axis=-1)

    # Final (tiny, scalar) reduction over R elements stays as XLA glue.
    if reduction == "sum":
        y = jnp.sum(y)
    elif reduction == "mean":
        y = jnp.mean(y)

    if full:
        y = y * 10.0

    if jnp.issubdtype(orig_dtype, jnp.floating):
        y = y.astype(orig_dtype)
    return y


def _reference(s, sn, *, frame_length=None, full=False, reduction="mean",
               eps=1e-8):
    """Pure-JAX reference mirroring the PyTorch forward exactly."""
    if frame_length is not None:
        L = frame_length
        n_frames = s.shape[-1] // L
        s = s[..., : n_frames * L].reshape(s.shape[:-1] + (n_frames, L))
        sn = sn[..., : n_frames * L].reshape(sn.shape[:-1] + (n_frames, L))
    s2 = jnp.sum(jnp.square(s), axis=-1)
    n2 = jnp.sum(jnp.square(sn - s), axis=-1)
    y = jnp.log10((s2 + eps) / (n2 + eps))
    if frame_length is not None and y.ndim > 0 and y.shape[-1] == 1:
        y = jnp.squeeze(y, axis=-1)
    if reduction == "sum":
        y = jnp.sum(y)
    elif reduction == "mean":
        y = jnp.mean(y)
    if full:
        y = y * 10.0
    return y


if __name__ == "__main__":
    key = jax.random.PRNGKey(0)
    k1, k2, k3, k4, k5, k6 = jax.random.split(key, 6)

    ok = True

    # Small shapes: batch=2, channels=4, seq=128 (frame_length=16 -> 8 frames).
    s = jax.random.normal(k1, (2, 4, 128), dtype=jnp.float32)
    sn = s + 0.1 * jax.random.normal(k2, (2, 4, 128), dtype=jnp.float32)

    # Case 1: plain SNR, full=True, reduction='mean'.
    y1 = signal_to_noise_ratio(s, sn, full=True, reduction="mean")
    r1 = _reference(s, sn, full=True, reduction="mean")
    jax.block_until_ready(y1)
    ok &= bool(np.allclose(np.asarray(y1), np.asarray(r1), rtol=1e-5, atol=1e-5))

    # Case 2: segmental SNR, frame_length=16, reduction='none'.
    y2 = signal_to_noise_ratio(s, sn, frame_length=16, full=True,
                               reduction="none")
    r2 = _reference(s, sn, frame_length=16, full=True, reduction="none")
    jax.block_until_ready(y2)
    ok &= y2.shape == r2.shape == (2, 4, 8)
    ok &= bool(np.allclose(np.asarray(y2), np.asarray(r2), rtol=1e-5, atol=1e-5))

    # Case 3: default config (frame_length=None, full=False, reduction='mean').
    y3 = signal_to_noise_ratio(s, sn)
    r3 = _reference(s, sn)
    jax.block_until_ready(y3)
    ok &= bool(np.allclose(np.asarray(y3), np.asarray(r3), rtol=1e-5, atol=1e-5))

    # Case 4: few long rows -> single-pass variant with full-row blocks.
    s_long = jax.random.normal(k3, (4, 70000), dtype=jnp.float32)
    sn_long = s_long + 0.1 * jax.random.normal(k4, (4, 70000),
                                               dtype=jnp.float32)
    y4 = signal_to_noise_ratio(s_long, sn_long, reduction="none")
    r4 = _reference(s_long, sn_long, reduction="none")
    jax.block_until_ready(y4)
    ok &= y4.shape == r4.shape == (4,)
    ok &= bool(np.allclose(np.asarray(y4), np.asarray(r4), rtol=1e-4, atol=1e-4))

    # Case 5: many long rows -> streaming variant (tiled reduction axis with
    # lane-dense accumulators and a last-step-only tail mask).
    s_str = jax.random.normal(k5, (8, 150000), dtype=jnp.float32)
    sn_str = s_str + 0.1 * jax.random.normal(k6, (8, 150000),
                                             dtype=jnp.float32)
    y5 = signal_to_noise_ratio(s_str, sn_str, reduction="none")
    r5 = _reference(s_str, sn_str, reduction="none")
    jax.block_until_ready(y5)
    ok &= y5.shape == r5.shape == (8,)
    ok &= bool(np.allclose(np.asarray(y5), np.asarray(r5), rtol=1e-4, atol=1e-4))

    # Case 6: bf16 inputs (native-dtype blocks, 16-row sublane packing).
    s_bf = jax.random.normal(k1, (4, 8, 256), dtype=jnp.bfloat16)
    sn_bf = (s_bf.astype(jnp.float32)
             + 0.1 * jax.random.normal(k2, (4, 8, 256),
                                       dtype=jnp.float32)).astype(jnp.bfloat16)
    y6 = signal_to_noise_ratio(s_bf, sn_bf, full=True, reduction="none")
    r6 = _reference(s_bf.astype(jnp.float32), sn_bf.astype(jnp.float32),
                    full=True, reduction="none")
    jax.block_until_ready(y6)
    ok &= y6.shape == r6.shape == (4, 8)
    ok &= bool(np.allclose(np.asarray(y6, dtype=np.float32), np.asarray(r6),
                           rtol=2e-2, atol=2e-2))

    # Case 7: 1-D signal (docstring-style), scalar output.
    s1d = jax.random.normal(k3, (5,), dtype=jnp.float32)
    n1d = 0.1 * jax.random.normal(k4, (5,), dtype=jnp.float32)
    y7 = signal_to_noise_ratio(s1d, s1d + n1d, full=True)
    r7 = _reference(s1d, s1d + n1d, full=True)
    jax.block_until_ready(y7)
    ok &= bool(np.allclose(np.asarray(y7), np.asarray(r7), rtol=1e-5, atol=1e-5))

    print("KERNEL_OK" if ok else "MISMATCH")
</pallas_src>

<mosaic_0001>
module attributes {stable_mosaic.version = 11 : i64} {
  func.func @_snr_kernel(%arg0: i32, %arg1: memref<8x128xf32, #tpu.memory_space<vmem>>, %arg2: memref<8x128xf32, #tpu.memory_space<vmem>>, %arg3: memref<8x1xf32, #tpu.memory_space<vmem>>) attributes {dimension_semantics = [#tpu.dimension_semantics<parallel>], iteration_bounds = array<i64: 1>, scalar_prefetch = 0 : i64, scratch_operands = 0 : i64, tpu.core_type = #tpu.core_type<tc>, window_params = [{transform_indices = @transform_0, window_bounds = array<i64: 8, 128>}, {transform_indices = @transform_1, window_bounds = array<i64: 8, 128>}, {transform_indices = @transform_2, window_bounds = array<i64: 8, 1>}]} {
    %c0 = arith.constant 0 : index
    %c0_0 = arith.constant 0 : index
    %0 = vector.load %arg1[%c0, %c0_0] : memref<8x128xf32, #tpu.memory_space<vmem>>, vector<8x128xf32>
    %c0_1 = arith.constant 0 : index
    %c0_2 = arith.constant 0 : index
    %1 = vector.load %arg2[%c0_1, %c0_2] : memref<8x128xf32, #tpu.memory_space<vmem>>, vector<8x128xf32>
    %2 = arith.subf %1, %0 : vector<8x128xf32>
    %3 = arith.mulf %0, %0 : vector<8x128xf32>
    %cst = arith.constant dense<0.000000e+00> : vector<8xf32>
    %4 = vector.multi_reduction <add>, %3, %cst [1] : vector<8x128xf32> to vector<8xf32>
    %5 = vector.shape_cast %4 : vector<8xf32> to vector<8x1xf32>
    %6 = arith.mulf %2, %2 : vector<8x128xf32>
    %cst_3 = arith.constant dense<0.000000e+00> : vector<8xf32>
    %7 = vector.multi_reduction <add>, %6, %cst_3 [1] : vector<8x128xf32> to vector<8xf32>
    %8 = vector.shape_cast %7 : vector<8xf32> to vector<8x1xf32>
    %cst_4 = arith.constant 9.99999993E-9 : f32
    %9 = vector.broadcast %cst_4 : f32 to vector<8x1xf32>
    %10 = arith.addf %5, %9 : vector<8x1xf32>
    %11 = math.log %10 : vector<8x1xf32>
    %cst_5 = arith.constant 0.434294492 : f32
    %12 = vector.broadcast %cst_5 : f32 to vector<8x1xf32>
    %13 = arith.mulf %11, %12 : vector<8x1xf32>
    %cst_6 = arith.constant 9.99999993E-9 : f32
    %14 = vector.broadcast %cst_6 : f32 to vector<8x1xf32>
    %15 = arith.addf %8, %14 : vector<8x1xf32>
    %16 = math.log %15 : vector<8x1xf32>
    %cst_7 = arith.constant 0.434294492 : f32
    %17 = vector.broadcast %cst_7 : f32 to vector<8x1xf32>
    %18 = arith.mulf %16, %17 : vector<8x1xf32>
    %19 = arith.subf %13, %18 : vector<8x1xf32>
    %c0_8 = arith.constant 0 : index
    %c0_9 = arith.constant 0 : index
    %20 = vector.load %arg3[%c0_8, %c0_9] : memref<8x1xf32, #tpu.memory_space<vmem>>, vector<8x1xf32>
    tpu.vector_store %arg3[%c0_8, %c0_9], %19 {strides = array<i32>} : memref<8x1xf32, #tpu.memory_space<vmem>>, vector<8x1xf32>,
    return
  }
  func.func @transform_0(%arg0: i32) -> (i32, i32) {
    %c0_i32 = arith.constant 0 : i32
    %c0_i32_0 = arith.constant 0 : i32
    return %arg0, %c0_i32 : i32, i32
  }
  func.func @transform_1(%arg0: i32) -> (i32, i32) {
    %c0_i32 = arith.constant 0 : i32
    %c0_i32_0 = arith.constant 0 : i32
    return %arg0, %c0_i32 : i32, i32
  }
  func.func @transform_2(%arg0: i32) -> (i32, i32) {
    %c0_i32 = arith.constant 0 : i32
    %c0_i32_0 = arith.constant 0 : i32
    return %arg0, %c0_i32 : i32, i32
  }
}

</mosaic_0001>

<bundles_post_ra>
// kernel: tpu_custom_call.1
= control target key start
LH: loop header
LB: loop body
LE: loop exit
PB: predicated region body
PF: predicated region fallthrough
CT: control target
= control target key end

     0   :  { %7 = vsyncpa [#allocation3], 0  ;;  %s159_s0 = inlined_call_operand.hbm [shape: f32[8,128], index: 0, kind: input, shape index: {}]   ;;  %s160_s1 = inlined_call_operand.hbm [shape: f32[8,128], index: 1, kind: input, shape index: {}]   ;;  %s161_s2 = inlined_call_operand.vmem [shape: f32[8,1], index: 2, kind: output, shape index: {}]  }
   0x1   :  { %8 = vsyncpa [#allocation5], 0  ;;  %s115_s9 = smov [#allocation2]   ;;  %s116_s11 = smov [#allocation4]  }
   0x2   :  { %s15_s10 = sshll.u32 %s115_s9, 4  ;;  %s25_s12 = sshll.u32 %s116_s11, 4  ;;  %s16_s10 = int_to_ptr.vmem [resolvable:$true] %s15_s10  ;;  %s26_s12 = int_to_ptr.vmem [resolvable:$true] %s25_s12 }
   0x3   :  { %s67_s15 = scalar_lea.hbm %s159_s0, 128 }
   0x4   :  { %p68_p0 = scmp.ne.s32.totalorder %s159_s0, %s67_s15  ;;  %p71_p1 = scmp.lt.u32.totalorder %s67_s15, %s159_s0 }
   0x6   :  { %p73_p2 = pnand %p71_p1, %p68_p0 }
   0x8   :  { %76 = shalt.err (!%p73_p2)
}
   0x9   :  { %s77_s20 = scalar_lea.vmem %s16_s10, 128  ;;  %p82_p4 = scmp.lt.s32.totalorder %s16_s10, %s16_s10 }
   0xa   :  { %p78_p3 = scmp.ne.s32.totalorder %s16_s10, %s77_s20  ;;  %p83_p5 = scmp.lt.s32.totalorder %s77_s20, %s77_s20 }
   0xc   :  { %p84_p6 = por %p83_p5, %p82_p4 }
   0xe   :  { %p85_p7 = pnand %p84_p6, %p78_p3 }
  0x10   :  { %88 = shalt.err (!%p85_p7)
}
  0x11   :  { %18 = dma.hbm_to_vmem [thread:$0]  %s159_s0, 128, %s16_s10, [#allocation3]  }
  0x12   :  { %s89_s25 = scalar_lea.hbm %s160_s1, 128 }
  0x13   :  { %p90_p8 = scmp.ne.s32.totalorder %s160_s1, %s89_s25  ;;  %p93_p9 = scmp.lt.u32.totalorder %s89_s25, %s160_s1 }
  0x15   :  { %p95_p10 = pnand %p93_p9, %p90_p8 }
  0x17   :  { %98 = shalt.err (!%p95_p10)
}
  0x18   :  { %s99_s30 = scalar_lea.vmem %s26_s12, 128  ;;  %p104_p12 = scmp.lt.s32.totalorder %s26_s12, %s26_s12 }
  0x19   :  { %p100_p11 = scmp.ne.s32.totalorder %s26_s12, %s99_s30  ;;  %p105_p13 = scmp.lt.s32.totalorder %s99_s30, %s99_s30 }
  0x1b   :  { %p106_p0 = por %p105_p13, %p104_p12 }
  0x1d   :  { %p107_p1 = pnand %p106_p0, %p100_p11 }
  0x1f   :  { %110 = shalt.err (!%p107_p1)
}
  0x20   :  { %28 = dma.hbm_to_vmem [thread:$0]  %s160_s1, 128, %s26_s12, [#allocation5]  }
  0x21   :  { %111 = dma.done.wait [#allocation3], 128  }
  0x22   :  { %112 = vsyncadd [#allocation3], 4294967168 }
  0x23   :  { %113 = dma.done.wait [#allocation5], 128  }
  0x24   :  { %114 = vsyncadd [#allocation5], 4294967168  ;;  %v35_v0 = vld [vmem:[#allocation2] sm:$0xff]  ;;  %v36_v1 = vld [vmem:[#allocation4] sm:$0xff]  ;;  %vm53_vm0 = vcmask 7168  }
  0x25   :  { %v38_v2 = vmul.f32 %v35_v0, %v35_v0  ;;  %v37_v3 = vsub.f32 %v36_v1, %v35_v0 }
  0x27   :  { %39 = vadd.xlane.f32.xlu0 %v38_v2  ;;  %v41_v4 = vmul.f32 %v37_v3, %v37_v3 }
  0x2b   :  { %42 = vadd.xlane.f32.xlu0 %v41_v4 }
  0xb4   :  { %v40_v5 = vpop.xlane.xlu0 %39 }
  0xb5   :  { %v44_v6 = vadd.f32 1e-08, %v40_v5 }
  0xb7   :  { %63 = vlog2.f32 %v44_v6 }
  0xb8   :  { %v43_v7 = vpop.xlane.xlu0 %42 }
  0xb9   :  { %v48_v8 = vadd.f32 1e-08, %v43_v7 }
  0xbb   :  { %65 = vlog2.f32 %v48_v8 }
  0xc1   :  { %v64_v9 = vpop.eup %63 }
  0xc2   :  { %v46_v10 = vmul.f32 0.6931472, %v64_v9 }
  0xc4   :  { %v47_v13 = vmul.f32 0.4342945, %v46_v10 }
  0xc5   :  { %v66_v11 = vpop.eup %65 }
  0xc6   :  { %v50_v12 = vmul.f32 0.6931472, %v66_v11 }
  0xc8   :  { %v51_v14 = vmul.f32 0.4342945, %v50_v12 }
  0xca   :  { %v52_v15 = vsub.f32 %v47_v13, %v51_v14 }
  0xcc   :  { %54 = vst.msk [vmem:[%s161_s2] sm:$0xff] %vm53_vm0, %v52_v15 }
  0xcd   :  { %59 = vsyncpa [#allocation3], 1 }
  0xce   :  { %60 = vsyncpa [#allocation5], 1 }

</bundles_post_ra>
